<compile_context>
chip_gen: v6e
topology: v6e:2x2x1
jax: 0.10.0
libtpu: 0.0.40
codegen_flags: <defaults>
</compile_context>

<pallas_src>
import jax
import jax.numpy as jnp
from jax.experimental import pallas as pl
from jax.experimental.pallas import tpu as pltpu


def mlp_kernel(x_ref, w1_ref, w2_ref, w3_ref, b_ref, o_ref):
    # x_ref : (in_dim, tm)            rows-of-M on lanes
    # w1_ref: (hid, in_dim)           PyTorch (out_features, in_features) layout
    # w2_ref: (hid, hid)
    # w3_ref: (out_dim, hid)
    # b_ref : (2*hid + out_dim, 1)    packed biases [b1; b2; b3]
    # o_ref : (out_dim, tm)           lane-dense output block
    hid, in_dim = w1_ref.shape
    out_dim = w3_ref.shape[0]

    x = x_ref[...].astype(jnp.float32)
    w1 = w1_ref[...].astype(jnp.float32)
    b = b_ref[...].astype(jnp.float32)
    b1 = b[0:hid, :]
    b2 = b[hid:2 * hid, :]
    b3 = b[2 * hid:2 * hid + out_dim, :]

    # Layer 1: Linear(in_dim, hid) + ReLU.  K = in_dim is tiny (2), so use VPU
    # broadcast multiply-adds instead of an MXU pass.  (Dropout == identity.)
    h = w1[:, 0:1] * x[0:1, :]                       # (hid, 1)*(1, tm) -> (hid, tm)
    for k in range(1, in_dim):                       # static unroll, in_dim is small
        h = h + w1[:, k:k + 1] * x[k:k + 1, :]
    h = jnp.maximum(h + b1, 0.0)                     # (hid, tm)

    # Layer 2: Linear(hid, hid) + ReLU  ->  MXU
    h = jnp.dot(w2_ref[...], h, preferred_element_type=jnp.float32)
    h = jnp.maximum(h + b2, 0.0)                     # (hid, tm)

    # Final head: Linear(hid, out_dim)
    out = jnp.dot(w3_ref[...], h, preferred_element_type=jnp.float32) + b3
    o_ref[...] = out.astype(o_ref.dtype)             # full-width lane-dense store


def _round_up(v, m):
    return ((v + m - 1) // m) * m


def linear_mlp_forward(x, params, *, tm_max=2048):
    """x: (B, S, input_dim) float32.  Returns (B, S) when out_dim == 1 (squeeze(2))."""
    w1, b1, w2, b2, w3, b3 = params                  # W is (out_features, in_features)
    B, S, in_dim = x.shape
    hid = w1.shape[0]
    out_dim = w3.shape[0]
    M = B * S

    # Lane-aligned row tile: as large as reasonable, but keep >=2 grid steps
    # when M allows so both v7x TensorCores get work.  Grid is a cdiv, M padded.
    tm = max(128, min(tm_max, _round_up((M + 1) // 2, 128)))
    grid_m = pl.cdiv(M, tm)
    m_pad = grid_m * tm

    # Rows on the lane axis: (in_dim, M), zero-padded along M to a tile multiple.
    x_t = x.reshape(M, in_dim).T
    if m_pad != M:
        x_t = jnp.pad(x_t, ((0, 0), (0, m_pad - M)))

    b_packed = jnp.concatenate([b1, b2, b3]).reshape(2 * hid + out_dim, 1)

    out = pl.pallas_call(
        mlp_kernel,
        out_shape=jax.ShapeDtypeStruct((out_dim, m_pad), x.dtype),
        grid_spec=pltpu.PrefetchScalarGridSpec(
            num_scalar_prefetch=0,
            grid=(grid_m,),
            in_specs=[
                pl.BlockSpec((in_dim, tm), lambda i: (0, i)),            # x (transposed)
                pl.BlockSpec((hid, in_dim), lambda i: (0, 0)),           # W1 (resident)
                pl.BlockSpec((hid, hid), lambda i: (0, 0)),              # W2 (resident)
                pl.BlockSpec((out_dim, hid), lambda i: (0, 0)),          # W3 (resident)
                pl.BlockSpec((2 * hid + out_dim, 1), lambda i: (0, 0)),  # packed biases
            ],
            out_specs=pl.BlockSpec((out_dim, tm), lambda i: (0, i)),
        ),
        compiler_params=pltpu.CompilerParams(
            dimension_semantics=("parallel",)),
    )(x_t, w1, w2, w3, b_packed)

    out = out[:, :M]                                 # drop row padding
    if out_dim == 1:
        return out[0].reshape(B, S)                  # PyTorch squeeze(2) on (B, S, 1)
    return out.T.reshape(B, S, out_dim)              # squeeze(2) is a no-op otherwise


def init_params(key, in_dim, hid, out_dim, dtype=jnp.float32):
    """nn.Linear-style U(-1/sqrt(fan_in), 1/sqrt(fan_in)) init.
    Weights stored (out_features, in_features), matching PyTorch."""
    ks = jax.random.split(key, 6)

    def uni(k, shape, fan_in):
        bound = 1.0 / (fan_in ** 0.5)
        return jax.random.uniform(k, shape, dtype, -bound, bound)

    w1 = uni(ks[0], (hid, in_dim), in_dim)
    b1 = uni(ks[1], (hid,), in_dim)
    w2 = uni(ks[2], (hid, hid), hid)
    b2 = uni(ks[3], (hid,), hid)
    w3 = uni(ks[4], (out_dim, hid), hid)
    b3 = uni(ks[5], (out_dim,), hid)
    return (w1, b1, w2, b2, w3, b3)


def reference_forward(x, params):
    w1, b1, w2, b2, w3, b3 = params
    h = jnp.maximum(x @ w1.T + b1, 0.0)
    h = jnp.maximum(h @ w2.T + b2, 0.0)
    return jnp.squeeze(h @ w3.T + b3, axis=2)


if __name__ == "__main__":
    # Small shapes consistent with the module: batch=2, seq=8, input_dim=2
    IN_DIM, HIDDEN, OUT_DIM = 2, 32, 1
    B, S = 2, 8

    key = jax.random.PRNGKey(0)
    kx, kp = jax.random.split(key)
    x = jax.random.normal(kx, (B, S, IN_DIM), jnp.float32)
    params = init_params(kp, IN_DIM, HIDDEN, OUT_DIM)

    y = linear_mlp_forward(x, params)
    jax.block_until_ready(y)

    y_ref = reference_forward(x, params)
    assert y.shape == (B, S), y.shape
    assert jnp.allclose(y, y_ref, atol=1e-5, rtol=1e-5), "mismatch vs reference"

    print("KERNEL_OK")
</pallas_src>

<mosaic_0001>
module attributes {stable_mosaic.version = 11 : i64} {
  func.func @mlp_kernel(%arg0: i32, %arg1: memref<2x128xf32, #tpu.memory_space<vmem>>, %arg2: memref<32x2xf32, #tpu.memory_space<vmem>>, %arg3: memref<32x32xf32, #tpu.memory_space<vmem>>, %arg4: memref<1x32xf32, #tpu.memory_space<vmem>>, %arg5: memref<65x1xf32, #tpu.memory_space<vmem>>, %arg6: memref<1x128xf32, #tpu.memory_space<vmem>>) attributes {dimension_semantics = [#tpu.dimension_semantics<parallel>], iteration_bounds = array<i64: 1>, scalar_prefetch = 0 : i64, scratch_operands = 0 : i64, tpu.core_type = #tpu.core_type<tc>, window_params = [{transform_indices = @transform_0, window_bounds = array<i64: 2, 128>}, {pipeline_mode = #tpu.pipeline_mode<synchronous>, transform_indices = @transform_1, window_bounds = array<i64: 32, 2>}, {pipeline_mode = #tpu.pipeline_mode<synchronous>, transform_indices = @transform_2, window_bounds = array<i64: 32, 32>}, {pipeline_mode = #tpu.pipeline_mode<synchronous>, transform_indices = @transform_3, window_bounds = array<i64: 1, 32>}, {pipeline_mode = #tpu.pipeline_mode<synchronous>, transform_indices = @transform_4, window_bounds = array<i64: 65, 1>}, {transform_indices = @transform_5, window_bounds = array<i64: 1, 128>}]} {
    %c0 = arith.constant 0 : index
    %c0_0 = arith.constant 0 : index
    %0 = vector.load %arg1[%c0, %c0_0] : memref<2x128xf32, #tpu.memory_space<vmem>>, vector<2x128xf32>
    %c0_1 = arith.constant 0 : index
    %c0_2 = arith.constant 0 : index
    %1 = vector.load %arg2[%c0_1, %c0_2] : memref<32x2xf32, #tpu.memory_space<vmem>>, vector<32x2xf32>
    %c0_3 = arith.constant 0 : index
    %c0_4 = arith.constant 0 : index
    %2 = vector.load %arg5[%c0_3, %c0_4] : memref<65x1xf32, #tpu.memory_space<vmem>>, vector<65x1xf32>
    %3 = vector.extract_strided_slice %2 {offsets = [0, 0], sizes = [32, 1], strides = [1, 1]} : vector<65x1xf32> to vector<32x1xf32>
    %4 = vector.extract_strided_slice %2 {offsets = [32, 0], sizes = [32, 1], strides = [1, 1]} : vector<65x1xf32> to vector<32x1xf32>
    %5 = vector.extract_strided_slice %2 {offsets = [64, 0], sizes = [1, 1], strides = [1, 1]} : vector<65x1xf32> to vector<1x1xf32>
    %6 = vector.extract_strided_slice %1 {offsets = [0, 0], sizes = [32, 1], strides = [1, 1]} : vector<32x2xf32> to vector<32x1xf32>
    %7 = vector.extract_strided_slice %0 {offsets = [0, 0], sizes = [1, 128], strides = [1, 1]} : vector<2x128xf32> to vector<1x128xf32>
    %8 = vector.broadcast %6 : vector<32x1xf32> to vector<32x128xf32>
    %9 = vector.broadcast %7 : vector<1x128xf32> to vector<32x128xf32>
    %10 = arith.mulf %8, %9 : vector<32x128xf32>
    %11 = vector.extract_strided_slice %1 {offsets = [0, 1], sizes = [32, 1], strides = [1, 1]} : vector<32x2xf32> to vector<32x1xf32>
    %12 = vector.extract_strided_slice %0 {offsets = [1, 0], sizes = [1, 128], strides = [1, 1]} : vector<2x128xf32> to vector<1x128xf32>
    %13 = vector.broadcast %11 : vector<32x1xf32> to vector<32x128xf32>
    %14 = vector.broadcast %12 : vector<1x128xf32> to vector<32x128xf32>
    %15 = arith.mulf %13, %14 : vector<32x128xf32>
    %16 = arith.addf %10, %15 : vector<32x128xf32>
    %17 = vector.broadcast %3 : vector<32x1xf32> to vector<32x128xf32>
    %18 = arith.addf %16, %17 : vector<32x128xf32>
    %cst = arith.constant 0.000000e+00 : f32
    %19 = vector.broadcast %cst : f32 to vector<32x128xf32>
    %20 = arith.maximumf %18, %19 : vector<32x128xf32>
    %c0_5 = arith.constant 0 : index
    %c0_6 = arith.constant 0 : index
    %21 = vector.load %arg3[%c0_5, %c0_6] : memref<32x32xf32, #tpu.memory_space<vmem>>, vector<32x32xf32>
    %cst_7 = arith.constant dense<0.000000e+00> : vector<32x128xf32>
    %22 = tpu.matmul %21, %20, %cst_7 {dimension_numbers = #tpu.dot_dimension_numbers<[1], [0], [0], [1], [0, 0, 1, 1], [], []>} : vector<32x32xf32>, vector<32x128xf32>, vector<32x128xf32> -> vector<32x128xf32>
    %23 = vector.broadcast %4 : vector<32x1xf32> to vector<32x128xf32>
    %24 = arith.addf %22, %23 : vector<32x128xf32>
    %cst_8 = arith.constant 0.000000e+00 : f32
    %25 = vector.broadcast %cst_8 : f32 to vector<32x128xf32>
    %26 = arith.maximumf %24, %25 : vector<32x128xf32>
    %c0_9 = arith.constant 0 : index
    %c0_10 = arith.constant 0 : index
    %27 = vector.load %arg4[%c0_9, %c0_10] : memref<1x32xf32, #tpu.memory_space<vmem>>, vector<1x32xf32>
    %cst_11 = arith.constant dense<0.000000e+00> : vector<1x128xf32>
    %28 = tpu.matmul %27, %26, %cst_11 {dimension_numbers = #tpu.dot_dimension_numbers<[1], [0], [0], [1], [0, 0, 1, 1], [], []>} : vector<1x32xf32>, vector<32x128xf32>, vector<1x128xf32> -> vector<1x128xf32>
    %29 = vector.broadcast %5 : vector<1x1xf32> to vector<1x128xf32>
    %30 = arith.addf %28, %29 : vector<1x128xf32>
    %c0_12 = arith.constant 0 : index
    %c0_13 = arith.constant 0 : index
    %31 = vector.load %arg6[%c0_12, %c0_13] : memref<1x128xf32, #tpu.memory_space<vmem>>, vector<1x128xf32>
    tpu.vector_store %arg6[%c0_12, %c0_13], %30 {strides = array<i32>} : memref<1x128xf32, #tpu.memory_space<vmem>>, vector<1x128xf32>,
    return
  }
  func.func @transform_0(%arg0: i32) -> (i32, i32) {
    %c0_i32 = arith.constant 0 : i32
    %c0_i32_0 = arith.constant 0 : i32
    return %c0_i32, %arg0 : i32, i32
  }
  func.func @transform_1(%arg0: i32) -> (i32, i32) {
    %c0_i32 = arith.constant 0 : i32
    %c0_i32_0 = arith.constant 0 : i32
    %c0_i32_1 = arith.constant 0 : i32
    return %c0_i32, %c0_i32_0 : i32, i32
  }
  func.func @transform_2(%arg0: i32) -> (i32, i32) {
    %c0_i32 = arith.constant 0 : i32
    %c0_i32_0 = arith.constant 0 : i32
    %c0_i32_1 = arith.constant 0 : i32
    return %c0_i32, %c0_i32_0 : i32, i32
  }
  func.func @transform_3(%arg0: i32) -> (i32, i32) {
    %c0_i32 = arith.constant 0 : i32
    %c0_i32_0 = arith.constant 0 : i32
    %c0_i32_1 = arith.constant 0 : i32
    return %c0_i32, %c0_i32_0 : i32, i32
  }
  func.func @transform_4(%arg0: i32) -> (i32, i32) {
    %c0_i32 = arith.constant 0 : i32
    %c0_i32_0 = arith.constant 0 : i32
    %c0_i32_1 = arith.constant 0 : i32
    return %c0_i32, %c0_i32_0 : i32, i32
  }
  func.func @transform_5(%arg0: i32) -> (i32, i32) {
    %c0_i32 = arith.constant 0 : i32
    %c0_i32_0 = arith.constant 0 : i32
    return %c0_i32, %arg0 : i32, i32
  }
}

</mosaic_0001>

<bundles_post_ra>
// kernel: tpu_custom_call.1
= control target key start
LH: loop header
LB: loop body
LE: loop exit
PB: predicated region body
PF: predicated region fallthrough
CT: control target
= control target key end

     0   :  { %v416_v2 = vmov 1   ;;  %v417_v3 = vmov 0   ;;  %s516_s0 = inlined_call_operand.vmem [shape: f32[2,128], index: 0, kind: input, shape index: {}]   ;;  %s517_s1 = inlined_call_operand.vmem [shape: f32[32,2], index: 1, kind: input, shape index: {}]   ;;  %s518_s2 = inlined_call_operand.vmem [shape: f32[32,32], index: 2, kind: input, shape index: {}]   ;;  %s519_s3 = inlined_call_operand.vmem [shape: f32[1,32], index: 3, kind: input, shape index: {}]   ;;  %s520_s4 = inlined_call_operand.vmem [shape: f32[65,1], index: 4, kind: input, shape index: {}]   ;;  %s521_s5 = inlined_call_operand.hbm [shape: f32[1,128], index: 5, kind: output, shape index: {}]  }
   0x1   :  { %v25_v0 = vld [vmem:[%s517_s1 + $0x18] sm:$0xff]  ;;  %v24_v1 = vld [vmem:[%s517_s1 + $0x10] sm:$0xff]  ;;  %387 = vset.pattern.permute.xlu0 %v416_v2  ;;  %388 = vset.pattern.permute.xlu1 %v417_v3  ;;  %v23_v4 = vld [vmem:[%s517_s1 + $0x8] sm:$0xff] }
   0x2   :  { %76 = vperm.xlu0 %387, %v25_v0   ;;  %47 = vperm.xlu1 %388, %v24_v1  }
   0x3   :  { %10 = vsyncpa [#allocation3], 0  ;;  %v22_v5 = vld [vmem:[%s517_s1] sm:$0xff]  ;;  %v29_v6 = vld [vmem:[%s520_s4 + $0x18] sm:$0xff]  ;;  %vm143_vm0 = vcmask 261120   ;;  %v55_v16 = vlaneseq  ;;  %v418_v58 = vmov 0.0  }
   0x4   :  { %v27_v7 = vld [vmem:[%s520_s4 + $0x8] sm:$0xff]  ;;  %v33_v8 = vld [vmem:[%s520_s4 + $0x38] sm:$0xff]  ;;  %v28_v9 = vld [vmem:[%s520_s4 + $0x10] sm:$0xff]  ;;  %371 = vmatprep.subr.mxu1 %v418_v58  ;;  %vm419_vm1 = vmmov 0   ;;  %s420_s27 = smov [#allocation2]  }
   0x5   :  { %v31_v10 = vld [vmem:[%s520_s4 + $0x28] sm:$0xff]  ;;  %v26_v11 = vld [vmem:[%s520_s4] sm:$0xff]  ;;  %v32_v14 = vld [vmem:[%s520_s4 + $0x30] sm:$0xff]  ;;  %v56_v17 = vshrl.u32 %v55_v16, 7  ;;  %379 = vmatprep.mubr.msk.f32.mxu1 %vm419_vm1, %v418_v58  ;;  %s331_s28 = sshll.u32 %s420_s27, 4  ;;  %s332_s28 = int_to_ptr.vmem [resolvable:$true] %s331_s28 }
   0x6   :  { %389 = vset.pattern.permute.xlu1 %v416_v2  ;;  %68 = vperm.xlu0 %387, %v23_v4   ;;  %v34_v12 = vld [vmem:[%s520_s4 + $0x40] sm:$0x1]  ;;  %v120_v55 = vld [vmem:[%s518_s2 + $0x8] sm:$0xff]  ;;  %v121_v56 = vld [vmem:[%s518_s2 + $0x10] sm:$0xff]  ;;  %s394_s29 = scalar_lea.vmem %s332_s28, 16  ;;  %s398_s30 = scalar_lea.vmem %s332_s28, 32 }
   0x7   :  { %72 = vperm.xlu1 %389, %v24_v1   ;;  %v119_v13 = vld [vmem:[%s518_s2] sm:$0xff]  ;;  %v81_v20 = vsub.s32 1, %v56_v17  ;;  %v57_v21 = vsub.s32 0, %v56_v17  ;;  %v122_v57 = vld [vmem:[%s518_s2 + $0x18] sm:$0xff]  ;;  %p395_p0 = scmp.ne.s32.totalorder %s332_s28, %s394_s29  ;;  %p399_p1 = scmp.lt.s32.totalorder %s332_s28, %s332_s28 }
   0x8   :  { %365 = vmatprep.mubr.msk.f32.mxu0 %vm143_vm0, %v119_v13  ;;  %v30_v15 = vld [vmem:[%s520_s4 + $0x20] sm:$0xff]  ;;  %p400_p2 = scmp.lt.s32.totalorder %s398_s30, %s394_s29 }
   0x9   :  { %v21_v23 = vld [vmem:[%s516_s0] sm:$0x3] }
   0xa   :  { %391 = vset.pattern.permute.xlu0 %v417_v3  ;;  %v82_v25 = vrot.slane %v21_v23, %v81_v20  ;;  %v58_v26 = vrot.slane %v21_v23, %v57_v21  ;;  %p401_p3 = por %p400_p2, %p399_p1 }
   0xb   :  { %390 = vset.pattern.permute.xlu1 %v417_v3  ;;  %52 = vperm.xlu0 %391, %v25_v0  }
   0xc   :  { %42 = vperm.xlu1 %390, %v23_v4   ;;  %p402_p4 = pnand %p401_p3, %p395_p0 }
   0xf   :  { %37 = vperm.xlu0 %391, %v22_v5  }
  0x10   :  { %108 = vperm.xlu1 %390, %v29_v6  }
  0x13   :  { %98 = vperm.xlu0 %391, %v27_v7  }
  0x14   :  { %392 = vset.pattern.permute.xlu1 %v416_v2 }
  0x15   :  { %64 = vperm.xlu1 %392, %v22_v5  }
  0x17   :  { %140 = vperm.xlu0 %391, %v33_v8  }
  0x19   :  { %393 = vset.pattern.permute.xlu1 %v417_v3 }
  0x1a   :  { %103 = vperm.xlu1 %393, %v28_v9  }
  0x1b   :  { %130 = vperm.xlu0 %391, %v31_v10  }
  0x1e   :  { %93 = vperm.xlu1 %393, %v26_v11   ;;  %v245_v11 = vld [vmem:[%s519_s3] sm:$0x1] }
  0x1f   :  { %248 = vperm.xlu0 %391, %v34_v12  }
  0x22   :  { %135 = vperm.xlu1 %393, %v32_v14  }
  0x26   :  { %125 = vperm.xlu1 %393, %v30_v15  }
  0x7d   :  { %v48_v18 = vpop.permute.xlu1 %47  ;;  %v77_v19 = vpop.permute.xlu0 %76 }
  0x7e   :  { %v86_v27 = vmul.f32 %v82_v25, %v77_v19  ;;  %v61_v40 = vmul.f32 %v58_v26, %v48_v18 }
  0x81   :  { %v69_v22 = vpop.permute.xlu0 %68 }
  0x82   :  { %v73_v24 = vpop.permute.xlu1 %72  ;;  %v84_v37 = vmul.f32 %v82_v25, %v69_v22 }
  0x83   :  { %v85_v36 = vmul.f32 %v82_v25, %v73_v24 }
  0x85   :  { %v89_v45 = vadd.f32 %v85_v36, %v61_v40 }
  0x86   :  { %v53_v28 = vpop.permute.xlu0 %52 }
  0x87   :  { %v62_v29 = vmul.f32 %v58_v26, %v53_v28  ;;  %v43_v30 = vpop.permute.xlu1 %42 }
  0x88   :  { %v60_v38 = vmul.f32 %v58_v26, %v43_v30 }
  0x89   :  { %v90_v31 = vadd.f32 %v86_v27, %v62_v29 }
  0x8a   :  { %v38_v34 = vpop.permute.xlu0 %37  ;;  %v88_v43 = vadd.f32 %v84_v37, %v60_v38 }
  0x8b   :  { %v109_v32 = vpop.permute.xlu1 %108  ;;  %v59_v42 = vmul.f32 %v58_v26, %v38_v34 }
  0x8c   :  { %v114_v33 = vadd.f32 %v109_v32, %v90_v31 }
  0x8e   :  { %v118_v35 = vmax.f32 %v114_v33, 0.0  ;;  %v99_v41 = vpop.permute.xlu0 %98 }
  0x8f   :  { %v112_v47 = vadd.f32 %v99_v41, %v88_v43 }
  0x90   :  { %v65_v39 = vpop.permute.xlu1 %64  ;;  %357 = vmatprep.subr.mxu0 %v118_v35 }
  0x91   :  { %358 = vmatpush3.msra.mxu0 %v118_v35  ;;  %v83_v44 = vmul.f32 %v82_v25, %v65_v39  ;;  %v116_v52 = vmax.f32 %v112_v47, 0.0 }
  0x92   :  { %v141_v59 = vpop.permute.xlu0 %140 }
  0x93   :  { %v87_v50 = vadd.f32 %v83_v44, %v59_v42 }
  0x95   :  { %v104_v46 = vpop.permute.xlu1 %103 }
  0x96   :  { %v113_v48 = vadd.f32 %v104_v46, %v89_v45  ;;  %v131_v1 = vpop.permute.xlu0 %130 }
  0x98   :  { %v117_v49 = vmax.f32 %v113_v48, 0.0 }
  0x99   :  { %v94_v51 = vpop.permute.xlu1 %93 }
  0x9a   :  { %v111_v53 = vadd.f32 %v94_v51, %v87_v50  ;;  %359 = vmatprep.subr.mxu0 %v117_v49  ;;  %v249_v12 = vpop.permute.xlu0 %248 }
  0x9b   :  { %360 = vmatpush3.msra.mxu0 %v117_v49 }
  0x9c   :  { %v115_v54 = vmax.f32 %v111_v53, 0.0  ;;  %361 = vmatprep.subr.mxu0 %v116_v52 }
  0x9d   :  { %362 = vmatpush3.msra.mxu0 %v116_v52  ;;  %v136_v61 = vpop.permute.xlu1 %135 }
  0x9e   :  { %363 = vmatprep.subr.mxu0 %v115_v54 }
  0x9f   :  { %364 = vmatpush3.msra.mxu0 %v115_v54 }
  0xa0   :  { %366 = vmatmul.mubr.msk.f32.vlgmr.msra.gmra.mxu0 %vm143_vm0, %v120_v55 }
  0xa1   :  { %368 = vmatprep.mubr.msk.f32.mxu0 %vm143_vm0, %v121_v56  ;;  %v126_v6 = vpop.permute.xlu1 %125 }
  0xa4   :  { %369 = vmatmul.mubr.msk.f32.gmra.mxu0 %vm143_vm0, %v122_v57 }
 0x160   :  { %v367_v60 = vpop.f32.mrf.mxu0 }
 0x161   :  { %v228_v3 = vadd.f32 %v367_v60, %v131_v1 }
 0x162   :  { %v222_v62 = vpop.f32.mrf.mxu0 }
 0x163   :  { %v223_v7 = vadd.f32 %v222_v62, %v126_v6  ;;  %v242_v9 = vmax.f32 %v228_v3, 0.0 }
 0x164   :  { %v370_v63 = vpop.f32.mrf.mxu0 }
 0x165   :  { %v238_v0 = vadd.f32 %v370_v63, %v141_v59  ;;  %v241_v10 = vmax.f32 %v223_v7, 0.0 }
 0x166   :  { %v232_v2 = vpop.f32.mrf.mxu0 }
 0x167   :  { %v244_v4 = vmax.f32 %v238_v0, 0.0  ;;  %v233_v5 = vadd.f32 %v232_v2, %v136_v61 }
 0x169   :  { %v243_v8 = vmax.f32 %v233_v5, 0.0  ;;  %372 = vmatpush3.msra.mxu1 %v244_v4 }
 0x16a   :  { %373 = vmatprep.subr.mxu1 %v418_v58 }
 0x16b   :  { %374 = vmatpush3.msra.mxu1 %v243_v8 }
 0x16c   :  { %375 = vmatprep.subr.mxu1 %v418_v58 }
 0x16d   :  { %376 = vmatpush3.msra.mxu1 %v242_v9 }
 0x16e   :  { %377 = vmatprep.subr.mxu1 %v418_v58 }
 0x16f   :  { %378 = vmatpush3.msra.mxu1 %v241_v10 }
 0x170   :  { %380 = vmatmul.mubr.msk.f32.vlgmr.msra.gmra.mxu1 %vm143_vm0, %v245_v11 }
 0x230   :  { %v320_v13 = vpop.f32.mrf.mxu1 }
 0x231   :  { %v321_v14 = vadd.f32 %v320_v13, %v249_v12 }
 0x232   :  { %v381_v15 = vpop.f32.mrf.mxu1 }
 0x233   :  { %324 = vst [vmem:[#allocation2] sm:$0x1] %v321_v14 }
 0x234   :  { %405 = shalt.err (!%p402_p4)
}
 0x235   :  { %334 = dma.vmem_to_hbm [thread:$0]  %s332_s28, 16, %s521_s5, [#allocation3]  }
 0x236   :  { %414 = dma.done.wait [#allocation3], 16  }
 0x237   :  { %415 = vsyncadd [#allocation3], 4294967280 }
 0x238   :  { %338 = vsyncpa [#allocation3], 1 }

</bundles_post_ra>
